<compile_context>
chip_gen: v5e
topology: v5e:2x2
jax: 0.10.0
libtpu: 0.0.40
codegen_flags: <defaults>
</compile_context>

<pallas_src>
import functools

import jax
import jax.numpy as jnp
from jax import lax
from jax.experimental import pallas as pl
from jax.experimental.pallas import tpu as pltpu


def _tl_kernel(scal_ref, f_ref, o_ref, acc_ref, prev_ref, *, tm, n_rows):
    """Accumulate sum(factor[g] . factor[g+1]) for the pairs owned by this row tile."""
    i = pl.program_id(0)

    @pl.when(i == 0)
    def _init():
        acc_ref[0] = jnp.float32(0.0)

    # Load the tile once; upcast on the VPU (input may be bf16, accumulate in f32).
    f = f_ref[...].astype(jnp.float32)                      # (tm, d)

    # Within-tile shifted products: row r -> factor[i*tm + r] * factor[i*tm + r + 1].
    prod = f[:-1, :] * f[1:, :]                             # (tm - 1, d)

    # Mask pairs that fall past the last valid row (ragged final tile).
    r = lax.broadcasted_iota(jnp.int32, (tm - 1, 1), 0)
    g = i * tm + r                                          # global index of pair's first row
    valid = g < (n_rows - 1)
    acc_ref[0] = acc_ref[0] + jnp.sum(jnp.where(valid, prod, 0.0))

    # Cross-tile pair: factor[i*tm - 1] . factor[i*tm], via the carried previous row.
    @pl.when(i > 0)
    def _cross():
        acc_ref[0] = acc_ref[0] + jnp.sum(prev_ref[...] * f[0:1, :])

    # Carry this tile's last row for the next grid step.
    prev_ref[...] = f[tm - 1:tm, :]

    @pl.when(i == pl.num_programs(0) - 1)
    def _finalize():
        weight = scal_ref[0]
        inv_denom = scal_ref[1]
        # ||scalar||_2 == |scalar|
        o_ref[0] = weight * jnp.abs(acc_ref[0]) * inv_denom


def tl_regularizer(factor: jax.Array, weight: float, *, block_rows: int = 512) -> jax.Array:
    """Pallas implementation of TL.forward(factor). Returns an f32 scalar."""
    n, d = factor.shape
    assert n >= 2, "TL regularizer needs at least 2 rows"

    if n <= block_rows:
        tm = n                      # full-extent block (always legal)
    else:
        assert block_rows % 8 == 0, "row tile must be a multiple of 8"
        tm = block_rows
    grid = pl.cdiv(n, tm)

    # Runtime scalars live in SMEM -> same compiled kernel for any weight value.
    scalars = jnp.array([weight, 1.0 / (n - 1)], dtype=jnp.float32)

    kernel = functools.partial(_tl_kernel, tm=tm, n_rows=n)

    out = pl.pallas_call(
        kernel,
        out_shape=jax.ShapeDtypeStruct((1,), jnp.float32),
        grid_spec=pltpu.PrefetchScalarGridSpec(
            num_scalar_prefetch=0,
            grid=(grid,),
            in_specs=[
                pl.BlockSpec(memory_space=pltpu.SMEM),          # [weight, 1/(n-1)]
                pl.BlockSpec((tm, d), lambda i: (i, 0)),        # row tile of factor
            ],
            out_specs=pl.BlockSpec(memory_space=pltpu.SMEM),    # scalar result
            scratch_shapes=[
                pltpu.SMEM((1,), jnp.float32),                  # running accumulator
                pltpu.VMEM((1, d), jnp.float32),                # carried last row of prev tile
            ],
        ),
        compiler_params=pltpu.CompilerParams(
            dimension_semantics=("arbitrary",),                 # sequential reduction with carry
        ),
    )(scalars, factor)
    return out[0]


def tl_reference(factor: jax.Array, weight: float) -> jax.Array:
    """Pure-JAX reference mirroring the PyTorch code literally (f32 accumulation)."""
    f = factor.astype(jnp.float32)
    dif = jnp.trace(jnp.matmul(f[1:], f[:-1].T))
    dif = jnp.abs(dif)  # 2-norm of a scalar
    return weight * dif / (factor.shape[0] - 1)


if __name__ == "__main__":
    key = jax.random.PRNGKey(0)
    k1, k2 = jax.random.split(key)

    # Primary: small shapes consistent with the module's forward (seq=8, hidden=32).
    factor = jax.random.normal(k1, (8, 32), dtype=jnp.float32)
    weight = 0.1
    out = tl_regularizer(factor, weight)
    jax.block_until_ready(out)
    ref = tl_reference(factor, weight)
    assert jnp.allclose(out, ref, rtol=1e-5, atol=1e-4), (out, ref)

    # Secondary: exercises the row-tiled path (grid=3, ragged last tile, cross-tile carry).
    factor2 = jax.random.normal(k2, (72, 128), dtype=jnp.float32)
    out2 = tl_regularizer(factor2, 0.25, block_rows=32)
    jax.block_until_ready(out2)
    ref2 = tl_reference(factor2, 0.25)
    assert jnp.allclose(out2, ref2, rtol=1e-5, atol=1e-4), (out2, ref2)

    print("KERNEL_OK")
</pallas_src>

<mosaic_0001>
module attributes {stable_mosaic.version = 11 : i64} {
  func.func @_tl_kernel(%arg0: i32, %arg1: memref<2xf32, #tpu.memory_space<smem>>, %arg2: memref<8x32xf32, #tpu.memory_space<vmem>>, %arg3: memref<1xf32, #tpu.memory_space<smem>>, %arg4: memref<1xf32, #tpu.memory_space<smem>>, %arg5: memref<1x32xf32, #tpu.memory_space<vmem>>) attributes {dimension_semantics = [#tpu.dimension_semantics<arbitrary>], iteration_bounds = array<i64: 1>, scalar_prefetch = 0 : i64, scratch_operands = 2 : i64, tpu.core_type = #tpu.core_type<tc>, window_params = [{transform_indices = @transform_0, window_bounds = array<i64: 2>}, {transform_indices = @transform_1, window_bounds = array<i64: 8, 32>}, {transform_indices = @transform_2, window_bounds = array<i64: 1>}]} {
    %c0_i32 = arith.constant 0 : i32
    %0 = arith.cmpi eq, %arg0, %c0_i32 : i32
    %1 = arith.extui %0 : i1 to i32
    %c0_i32_0 = arith.constant 0 : i32
    %2 = arith.cmpi ne, %1, %c0_i32_0 : i32
    scf.if %2 {
      %cst_11 = arith.constant 0.000000e+00 : f32
      %c0_12 = arith.constant 0 : index
      %32 = memref.load %arg4[%c0_12] : memref<1xf32, #tpu.memory_space<smem>>
      memref.store %cst_11, %arg4[%c0_12] : memref<1xf32, #tpu.memory_space<smem>>
    } else {
    }
    %c0 = arith.constant 0 : index
    %c0_1 = arith.constant 0 : index
    %3 = vector.load %arg2[%c0, %c0_1] : memref<8x32xf32, #tpu.memory_space<vmem>>, vector<8x32xf32>
    %4 = vector.extract_strided_slice %3 {offsets = [0, 0], sizes = [7, 32], strides = [1, 1]} : vector<8x32xf32> to vector<7x32xf32>
    %5 = vector.extract_strided_slice %3 {offsets = [1, 0], sizes = [7, 32], strides = [1, 1]} : vector<8x32xf32> to vector<7x32xf32>
    %6 = arith.mulf %4, %5 : vector<7x32xf32>
    %7 = tpu.iota {dimensions = array<i32: 0>} : vector<7x1xi32>
    %c8_i32 = arith.constant 8 : i32
    %8 = arith.muli %arg0, %c8_i32 : i32
    %9 = vector.broadcast %8 : i32 to vector<7x1xi32>
    %10 = arith.addi %9, %7 : vector<7x1xi32>
    %c7_i32 = arith.constant 7 : i32
    %11 = vector.broadcast %c7_i32 : i32 to vector<7x1xi32>
    %12 = arith.cmpi slt, %10, %11 : vector<7x1xi32>
    %c0_2 = arith.constant 0 : index
    %13 = memref.load %arg4[%c0_2] : memref<1xf32, #tpu.memory_space<smem>>
    %cst = arith.constant 0.000000e+00 : f32
    %14 = vector.shape_cast %12 : vector<7x1xi1> to vector<7x1xi1>
    %15 = vector.broadcast %14 : vector<7x1xi1> to vector<7x32xi1>
    %16 = vector.broadcast %cst : f32 to vector<7x32xf32>
    %17 = arith.select %15, %6, %16 : vector<7x32xi1>, vector<7x32xf32>
    %18 = vector.shape_cast %17 : vector<7x32xf32> to vector<1x7x32xf32>
    %cst_3 = arith.constant dense<0.000000e+00> : vector<1xf32>
    %19 = vector.multi_reduction <add>, %18, %cst_3 [1, 2] : vector<1x7x32xf32> to vector<1xf32>
    %20 = vector.shape_cast %19 : vector<1xf32> to vector<1x1x1xf32>
    %21 = vector.extract %20[0, 0, 0] : f32 from vector<1x1x1xf32>
    %22 = arith.addf %13, %21 : f32
    %c0_4 = arith.constant 0 : index
    %23 = memref.load %arg4[%c0_4] : memref<1xf32, #tpu.memory_space<smem>>
    memref.store %22, %arg4[%c0_4] : memref<1xf32, #tpu.memory_space<smem>>
    %c0_i32_5 = arith.constant 0 : i32
    %24 = arith.cmpi sgt, %arg0, %c0_i32_5 : i32
    %25 = arith.extui %24 : i1 to i32
    %c0_i32_6 = arith.constant 0 : i32
    %26 = arith.cmpi ne, %25, %c0_i32_6 : i32
    scf.if %26 {
      %c0_11 = arith.constant 0 : index
      %32 = memref.load %arg4[%c0_11] : memref<1xf32, #tpu.memory_space<smem>>
      %c0_12 = arith.constant 0 : index
      %c0_13 = arith.constant 0 : index
      %33 = vector.load %arg5[%c0_12, %c0_13] : memref<1x32xf32, #tpu.memory_space<vmem>>, vector<1x32xf32>
      %34 = vector.extract_strided_slice %3 {offsets = [0, 0], sizes = [1, 32], strides = [1, 1]} : vector<8x32xf32> to vector<1x32xf32>
      %35 = arith.mulf %33, %34 : vector<1x32xf32>
      %36 = vector.shape_cast %35 : vector<1x32xf32> to vector<1x1x32xf32>
      %cst_14 = arith.constant dense<0.000000e+00> : vector<1xf32>
      %37 = vector.multi_reduction <add>, %36, %cst_14 [1, 2] : vector<1x1x32xf32> to vector<1xf32>
      %38 = vector.shape_cast %37 : vector<1xf32> to vector<1x1x1xf32>
      %39 = vector.extract %38[0, 0, 0] : f32 from vector<1x1x1xf32>
      %40 = arith.addf %32, %39 : f32
      %c0_15 = arith.constant 0 : index
      %41 = memref.load %arg4[%c0_15] : memref<1xf32, #tpu.memory_space<smem>>
      memref.store %40, %arg4[%c0_15] : memref<1xf32, #tpu.memory_space<smem>>
    } else {
    }
    %27 = vector.extract_strided_slice %3 {offsets = [7, 0], sizes = [1, 32], strides = [1, 1]} : vector<8x32xf32> to vector<1x32xf32>
    %c0_7 = arith.constant 0 : index
    %c0_8 = arith.constant 0 : index
    %28 = vector.load %arg5[%c0_7, %c0_8] : memref<1x32xf32, #tpu.memory_space<vmem>>, vector<1x32xf32>
    tpu.vector_store %arg5[%c0_7, %c0_8], %27 {strides = array<i32>} : memref<1x32xf32, #tpu.memory_space<vmem>>, vector<1x32xf32>,
    %c0_i32_9 = arith.constant 0 : i32
    %29 = arith.cmpi eq, %arg0, %c0_i32_9 : i32
    %30 = arith.extui %29 : i1 to i32
    %c0_i32_10 = arith.constant 0 : i32
    %31 = arith.cmpi ne, %30, %c0_i32_10 : i32
    scf.if %31 {
      %c0_11 = arith.constant 0 : index
      %32 = memref.load %arg1[%c0_11] : memref<2xf32, #tpu.memory_space<smem>>
      %c1 = arith.constant 1 : index
      %33 = memref.load %arg1[%c1] : memref<2xf32, #tpu.memory_space<smem>>
      %c0_12 = arith.constant 0 : index
      %34 = memref.load %arg4[%c0_12] : memref<1xf32, #tpu.memory_space<smem>>
      %35 = math.absf %34 : f32
      %36 = arith.mulf %32, %35 : f32
      %37 = arith.mulf %36, %33 : f32
      %c0_13 = arith.constant 0 : index
      %38 = memref.load %arg3[%c0_13] : memref<1xf32, #tpu.memory_space<smem>>
      memref.store %37, %arg3[%c0_13] : memref<1xf32, #tpu.memory_space<smem>>
    } else {
    }
    return
  }
  func.func @transform_0(%arg0: i32) -> i32 {
    %c0_i32 = arith.constant 0 : i32
    %c0_i32_0 = arith.constant 0 : i32
    return %c0_i32 : i32
  }
  func.func @transform_1(%arg0: i32) -> (i32, i32) {
    %c0_i32 = arith.constant 0 : i32
    %c0_i32_0 = arith.constant 0 : i32
    return %arg0, %c0_i32 : i32, i32
  }
  func.func @transform_2(%arg0: i32) -> i32 {
    %c0_i32 = arith.constant 0 : i32
    %c0_i32_0 = arith.constant 0 : i32
    return %c0_i32 : i32
  }
}

</mosaic_0001>

<bundles_post_ra>
// kernel: tpu_custom_call.1
= control target key start
LH: loop header
LB: loop body
LE: loop exit
PB: predicated region body
PF: predicated region fallthrough
CT: control target
= control target key end

     0   :  { %7 = vsyncpa [#allocation6], 0  ;;  %s211_s0 = inlined_call_operand.hbm [shape: f32[2], index: 0, kind: input, shape index: {}]   ;;  %s212_s1 = inlined_call_operand.hbm [shape: f32[8,32], index: 1, kind: input, shape index: {}]   ;;  %s213_s2 = inlined_call_operand.hbm [shape: f32[1], index: 2, kind: output, shape index: {}]  }
   0x1   :  { %8 = vsyncpa [#allocation5], 0 }
   0x2   :  { %9 = vsyncpa [#allocation7], 0  ;;  %s15_s11 = sshll.u32 %s211_s0, 4  ;;  %s24_s14 = sshll.u32 %s212_s1, 4  ;;  %s16_s11 = int_to_ptr.hbm [resolvable:$true] %s15_s11  ;;  %s25_s14 = int_to_ptr.hbm [resolvable:$true] %s24_s14 }
   0x3   :  { %s184_s15 = smov [#allocation4]   ;;  %s185_s16 = smov [#allocation8]  }
   0x4   :  { %18 = dma.hbm_to_smem %s16_s11, 16, %s184_s15, [#allocation6]  }
   0x5   :  { %s26_s17 = sshll.u32 %s185_s16, 4  ;;  %s27_s17 = int_to_ptr.vmem [resolvable:$true] %s26_s17 }
   0x6   :  { %29 = dma.hbm_to_vmem [thread:$0]  %s25_s14, 128, %s27_s17, [#allocation5]  }
   0x7   :  { %178 = dma.done.wait [#allocation6], 16  }
   0x8   :  { %179 = vsyncadd [#allocation6], 4294967280 }
   0x9   :  { %180 = dma.done.wait [#allocation5], 128  }
   0xa   :  { %181 = vsyncadd [#allocation5], 4294967168 }
   0xb   :  { %38 = sfence }
   0xc   :  { %v45_v0 = vld [vmem:[#allocation8] sm:$0xff]  ;;  %v50_v1 = vlaneseq  ;;  %vm60_vm0 = vcmask 260096   ;;  %s99_s0 = sld [smem:[#allocation4]]  ;;  %s112_s21 = sshll.u32 %s213_s2, 4  ;;  %s113_s21 = int_to_ptr.hbm [resolvable:$true] %s112_s21 }
   0xd   :  { %v47_v2 = vrot.slane %v45_v0, 1  ;;  %s124_s1 = sld [smem:[#allocation4 + $0x1]]  ;;  %s186_s25 = smov [#allocation9]  }
   0xe   :  { %v51_v3 = vshrl.u32 %v50_v1, 7 }
   0xf   :  { %v49_v4 = vmul.f32 %v47_v2, %v45_v0 }
  0x10   :  { %vm55_vm1 = vcmp.lt.s32.totalorder %v51_v3, 7 }
  0x11   :  { %v59_v5 = vsel %vm55_vm1, %v49_v4, 0.0 }
  0x12   :  { %v61_v6 = vsel %vm60_vm0, %v59_v5, 0.0 }
  0x13   :  { %62 = vadd.xlane.f32.xlu0 %v61_v6 }
  0x86   :  { %v63_v7 = vpop.xlane.xlu0 %62 }
  0x87   :  { %v64_v8 = vrot.slane %v63_v7, 4 }
  0x89   :  { %v65_v9 = vadd.f32 %v64_v8, %v63_v7 }
  0x8b   :  { %v66_v10 = vrot.slane %v65_v9, 2 }
  0x8d   :  { %v67_v11 = vadd.f32 %v66_v10, %v65_v9 }
  0x8f   :  { %v68_v12 = vrot.slane %v67_v11, 1 }
  0x91   :  { %v69_v13 = vadd.f32 %v68_v12, %v67_v11 }
  0x93   :  { %125 = vpush %v69_v13 }
  0xc4   :  { %s126_s18 = spop %125 }
  0xc5   :  { %s102_s22 = sand.u32 2147483647, %s126_s18 }
  0xc6   :  { %s103_s23 = smul.f32 %s102_s22, %s99_s0 }
  0xc8   :  { %s104_s24 = smul.f32 %s124_s1, %s103_s23 }
  0xca   :  { %106 = sst [smem:[#allocation9]] %s104_s24 }
  0xcb   :  { %115 = dma.smem_to_hbm %s186_s25, 16, %s113_s21, [#allocation7]  }
  0xcc   :  { %182 = dma.done.wait [#allocation7], 16  }
  0xcd   :  { %183 = vsyncadd [#allocation7], 4294967280 }
  0xce   :  { %120 = sfence }
  0xcf   :  { %121 = vsyncpa [#allocation5], 1 }
  0xd0   :  { %122 = vsyncpa [#allocation6], 1 }
  0xd1   :  { %123 = vsyncpa [#allocation7], 1 }

</bundles_post_ra>
